<compile_context>
chip_gen: v7x
topology: tpu7x:2x2x1
jax: 0.10.0
libtpu: 0.0.40
codegen_flags: <defaults>
</compile_context>

<pallas_src>
from functools import partial

import numpy as np
import jax
import jax.numpy as jnp
from jax.experimental import pallas as pl
from jax.experimental.pallas import tpu as pltpu


def _pick_channel_tile(C):
    """Largest channel tile <= 8 that divides C, preferring >= 2 grid steps."""
    for ct in (8, 4, 2, 1):
        if C % ct == 0 and ct < C:
            return ct
    return C


def _dft_operands(H, W, WfP, WP):
    """bf16 DFT operators so rfft2 / irfft2 become 4 MXU matmuls.

    Invariant: every padded row/column (w >= W, wf >= Wf) is exactly zero so
    nothing can leak through the padded frequency lanes.
    """
    Wf = W // 2 + 1
    h = np.arange(H)
    w = np.arange(W)
    wf = np.arange(Wf)

    # Forward one-sided DFT along W (right operand), [Re | Im], lane-padded.
    ang_w = 2.0 * np.pi * np.outer(w, wf) / W                    # (W, Wf)
    FW = np.zeros((W, 2 * WfP), np.float64)
    FW[:, :Wf] = np.cos(ang_w)
    FW[:, WfP:WfP + Wf] = -np.sin(ang_w)

    # Forward complex DFT along H, real/imag fused -> (2H, 2H); K = 2H.
    ang_h = 2.0 * np.pi * np.outer(h, h) / H
    C_h, S_h = np.cos(ang_h), np.sin(ang_h)
    FH_big = np.block([[C_h, S_h], [-S_h, C_h]])                 # (2H, 2H)

    # Inverse complex DFT along H, fused -> (2H, 2H).
    IH_big = np.block([[C_h / H, -S_h / H], [S_h / H, C_h / H]])

    # Hermitian one-sided inverse along W: resp = q_r @ CW - q_i @ SW.
    c = np.full((Wf,), 2.0)
    c[0] = 1.0
    if W % 2 == 0:
        c[-1] = 1.0
    ang_iw = 2.0 * np.pi * np.outer(wf, w) / W                   # (Wf, W)
    CS = np.zeros((2 * WfP, WP), np.float64)
    CS[:Wf, :W] = (c[:, None] * np.cos(ang_iw)) / W
    CS[WfP:WfP + Wf, :W] = -(c[:, None] * np.sin(ang_iw)) / W

    return [jnp.asarray(m, dtype=jnp.bfloat16)
            for m in (FW, FH_big, IH_big, CS)]


def dcf_kernel(z_ref, x_ref, yr_ref, yi_ref, fw_ref, fh_ref, ih_ref, cs_ref,
               out_ref, kzz_ref, kxzr_ref, kxzi_ref,
               *, lambda0, Ct, H, W, WfP):
    """Grid step = (batch b, channel tile ct).  kzzf/kxzf accumulate over ct."""
    ct = pl.program_id(1)
    dotf = partial(jnp.dot, preferred_element_type=jnp.float32)

    @pl.when(ct == 0)
    def _init():
        kzz_ref[...] = jnp.zeros_like(kzz_ref)
        kxzr_ref[...] = jnp.zeros_like(kxzr_ref)
        kxzi_ref[...] = jnp.zeros_like(kxzi_ref)

    # ---- W-axis one-sided DFT on the natural NCHW layout (1 MXU matmul) ----
    zb = z_ref[0].astype(jnp.bfloat16)                       # (Ct, H, W)
    xb = x_ref[0].astype(jnp.bfloat16)                       # (Ct, H, W)
    U = jnp.concatenate([zb, xb], axis=0).reshape(2 * Ct * H, W)   # rows=(t,c,h)
    VF = dotf(U, fw_ref[...]).astype(jnp.bfloat16)           # (2Ct*H, 2*WfP) [Re|Im]

    # ---- in-VMEM block regroup so the H-DFT contracts over fused K = 2H ----
    # A rows = (reim, h), cols = (t, c, wf).  All slices are 128-lane /
    # H-row blocks, so this is a tile-granular regroup (no cross-lane mask).
    VFr, VFi = VF[:, :WfP], VF[:, WfP:]
    Ar = jnp.concatenate(
        [VFr[tc * H:(tc + 1) * H, :] for tc in range(2 * Ct)], axis=1)
    Ai = jnp.concatenate(
        [VFi[tc * H:(tc + 1) * H, :] for tc in range(2 * Ct)], axis=1)
    A = jnp.concatenate([Ar, Ai], axis=0)                    # (2H, 2Ct*WfP) bf16

    G = dotf(fh_ref[...], A)                                 # (2H, 2Ct*WfP) f32
    Gr, Gi = G[:H], G[H:]                                    # Re / Im of fft2

    # ---- channel reduction: kzzf, |.|^2 and x*conj(z)  (f32 VPU) -----------
    kzz = kzz_ref[...]
    kxr = kxzr_ref[...]
    kxi = kxzi_ref[...]
    for c in range(Ct):
        zsl = slice(c * WfP, (c + 1) * WfP)                  # z channel block
        xsl = slice((Ct + c) * WfP, (Ct + c + 1) * WfP)      # x channel block
        zr, zi = Gr[:, zsl], Gi[:, zsl]
        xr, xi = Gr[:, xsl], Gi[:, xsl]
        kzz = kzz + (zr * zr + zi * zi)
        kxr = kxr + (xr * zr + xi * zi)                      # complex_mulconj re
        kxi = kxi + (xi * zr - xr * zi)                      # complex_mulconj im
    kzz_ref[...] = kzz
    kxzr_ref[...] = kxr
    kxzi_ref[...] = kxi

    # ---- last channel tile: regularized divide + inverse rFFT2 + store -----
    @pl.when(ct == pl.num_programs(1) - 1)
    def _finish():
        inv_d = pl.reciprocal(kzz_ref[...] + lambda0, approx=True)   # EUP slot
        a_r = yr_ref[...] * inv_d                                    # alphaf
        a_i = yi_ref[...] * inv_d
        p_r = kxzr_ref[...] * a_r - kxzi_ref[...] * a_i              # complex_mul
        p_i = kxzr_ref[...] * a_i + kxzi_ref[...] * a_r

        P = jnp.concatenate([p_r, p_i], axis=0).astype(jnp.bfloat16)   # (2H, WfP)
        Q = dotf(ih_ref[...], P)                                       # (2H, WfP)
        Qcat = jnp.concatenate([Q[:H], Q[H:]], axis=1).astype(jnp.bfloat16)
        out_ref[0] = dotf(Qcat, cs_ref[...])                           # (H, WP)


def dcf_layer(z, x, label, lambda0=1e-4):
    """JAX/Pallas equivalent of DCFLayer(lambda0).forward(z, x, label)."""
    B, C, H, W = z.shape
    Wf = W // 2 + 1
    assert label.shape == (1, 1, H, Wf, 2)

    WfP = 128 * pl.cdiv(Wf, 128)          # lane-padded frequency width
    WP = 128 * pl.cdiv(W, 128)            # lane-padded output width
    Ct = _pick_channel_tile(C)
    assert C % Ct == 0
    n_ct = C // Ct

    # Zero-padded label (real / imag), (H, WfP) f32 (tiny wrapper op).
    lab = label[0, 0].astype(jnp.float32)                    # (H, Wf, 2)
    y_r = jnp.zeros((H, WfP), jnp.float32).at[:, :Wf].set(lab[:, :, 0])
    y_i = jnp.zeros((H, WfP), jnp.float32).at[:, :Wf].set(lab[:, :, 1])

    FW, FH_big, IH_big, CS = _dft_operands(H, W, WfP, WP)    # bf16 operators

    def const(shape):
        return pl.BlockSpec(shape, lambda b, ct: (0, 0))

    grid_spec = pltpu.PrefetchScalarGridSpec(
        num_scalar_prefetch=0,
        grid=(B, n_ct),
        in_specs=[
            pl.BlockSpec((1, Ct, H, W), lambda b, ct: (b, ct, 0, 0)),   # z
            pl.BlockSpec((1, Ct, H, W), lambda b, ct: (b, ct, 0, 0)),   # x
            const((H, WfP)), const((H, WfP)),                           # label re/im
            const((W, 2 * WfP)),                                        # FW
            const((2 * H, 2 * H)),                                      # FH_big
            const((2 * H, 2 * H)),                                      # IH_big
            const((2 * WfP, WP)),                                       # CS
        ],
        out_specs=pl.BlockSpec((1, H, WP), lambda b, ct: (b, 0, 0)),
        scratch_shapes=[pltpu.VMEM((H, WfP), jnp.float32)] * 3,
    )

    kernel = partial(dcf_kernel, lambda0=float(lambda0),
                     Ct=Ct, H=H, W=W, WfP=WfP)
    out = pl.pallas_call(
        kernel,
        out_shape=jax.ShapeDtypeStruct((B, H, WP), jnp.float32),
        grid_spec=grid_spec,
        compiler_params=pltpu.CompilerParams(
            dimension_semantics=("parallel", "arbitrary")),
    )(z.astype(jnp.float32), x.astype(jnp.float32), y_r, y_i,
      FW, FH_big, IH_big, CS)

    # Drop lane padding, restore (B, 1, H, W).
    return out[:, :, :W][:, None, :, :]


if __name__ == "__main__":
    # Small test shapes; do NOT benchmark at these sizes (real DCFNet crops
    # are H,W ~ 121-128, C ~ 32).
    B, C, H, W = 2, 4, 16, 16
    Wf = W // 2 + 1
    lambda0 = 1e-4

    key = jax.random.PRNGKey(0)
    kz, kx = jax.random.split(key)
    z = jax.random.normal(kz, (B, C, H, W), dtype=jnp.float32)
    x = jax.random.normal(kx, (B, C, H, W), dtype=jnp.float32)

    # Deterministic DCF gaussian label in the Fourier domain (as in UDT/DCFNet):
    # label = torch.rfft(gaussian, signal_ndim=2) -> (1, 1, H, Wf, 2).
    sigma = 2.0
    gy = np.arange(H) - H // 2
    gx = np.arange(W) - W // 2
    GY, GX = np.meshgrid(gy, gx, indexing="ij")
    y_spatial = np.exp(-(GY ** 2 + GX ** 2) / (2.0 * sigma ** 2))
    y_spatial = np.roll(y_spatial, (-(H // 2), -(W // 2)), axis=(0, 1))
    yf = np.fft.rfft2(y_spatial)
    label_np = np.stack([yf.real, yf.imag], -1)[None, None].astype(np.float32)
    label = jnp.asarray(label_np)

    resp = dcf_layer(z, x, label, lambda0)
    resp = jax.block_until_ready(resp)

    # numpy reference of the PyTorch forward (exact f32/f64 math)
    zn, xn = np.asarray(z), np.asarray(x)
    zf = np.fft.rfft2(zn)
    xf = np.fft.rfft2(xn)
    kzzf = np.sum(np.abs(zf) ** 2, axis=1, keepdims=True)          # (B,1,H,Wf)
    kxzf = np.sum(xf * np.conj(zf), axis=1, keepdims=True)         # (B,1,H,Wf)
    lab_c = label_np[..., 0] + 1j * label_np[..., 1]               # (1,1,H,Wf)
    alphaf = lab_c / (kzzf + lambda0)
    ref = np.fft.irfft2(kxzf * alphaf, s=(H, W))                   # (B,1,H,W)

    resp_np = np.asarray(resp)
    assert resp_np.shape == (B, 1, H, W)
    # bf16 MXU operands + approx reciprocal => compare with a relative-L2 bound
    # (a structural bug produces O(1) relative error; bf16 noise is ~1%).
    rel_err = np.linalg.norm(resp_np - ref) / np.linalg.norm(ref)
    assert rel_err < 5e-2, f"relative L2 error too large: {rel_err}"
    print("KERNEL_OK")
</pallas_src>

<mosaic_0001>
module attributes {stable_mosaic.version = 11 : i64} {
  func.func @dcf_kernel(%arg0: i32, %arg1: i32, %arg2: memref<1x2x16x16xf32, #tpu.memory_space<vmem>>, %arg3: memref<1x2x16x16xf32, #tpu.memory_space<vmem>>, %arg4: memref<16x128xf32, #tpu.memory_space<vmem>>, %arg5: memref<16x128xf32, #tpu.memory_space<vmem>>, %arg6: memref<16x256xbf16, #tpu.memory_space<vmem>>, %arg7: memref<32x32xbf16, #tpu.memory_space<vmem>>, %arg8: memref<32x32xbf16, #tpu.memory_space<vmem>>, %arg9: memref<256x128xbf16, #tpu.memory_space<vmem>>, %arg10: memref<1x16x128xf32, #tpu.memory_space<vmem>>, %arg11: memref<16x128xf32, #tpu.memory_space<vmem>>, %arg12: memref<16x128xf32, #tpu.memory_space<vmem>>, %arg13: memref<16x128xf32, #tpu.memory_space<vmem>>) attributes {dimension_semantics = [#tpu.dimension_semantics<parallel>, #tpu.dimension_semantics<arbitrary>], iteration_bounds = array<i64: 2, 2>, scalar_prefetch = 0 : i64, scratch_operands = 3 : i64, tpu.core_type = #tpu.core_type<tc>, window_params = [{transform_indices = @transform_0, window_bounds = array<i64: 1, 2, 16, 16>}, {transform_indices = @transform_1, window_bounds = array<i64: 1, 2, 16, 16>}, {pipeline_mode = #tpu.pipeline_mode<synchronous>, transform_indices = @transform_2, window_bounds = array<i64: 16, 128>}, {pipeline_mode = #tpu.pipeline_mode<synchronous>, transform_indices = @transform_3, window_bounds = array<i64: 16, 128>}, {pipeline_mode = #tpu.pipeline_mode<synchronous>, transform_indices = @transform_4, window_bounds = array<i64: 16, 256>}, {pipeline_mode = #tpu.pipeline_mode<synchronous>, transform_indices = @transform_5, window_bounds = array<i64: 32, 32>}, {pipeline_mode = #tpu.pipeline_mode<synchronous>, transform_indices = @transform_6, window_bounds = array<i64: 32, 32>}, {pipeline_mode = #tpu.pipeline_mode<synchronous>, transform_indices = @transform_7, window_bounds = array<i64: 256, 128>}, {transform_indices = @transform_8, window_bounds = array<i64: 1, 16, 128>}]} {
    %c0_i32 = arith.constant 0 : i32
    %0 = arith.cmpi eq, %arg1, %c0_i32 : i32
    %1 = arith.extui %0 : i1 to i32
    %c0_i32_0 = arith.constant 0 : i32
    %2 = arith.cmpi ne, %1, %c0_i32_0 : i32
    scf.if %2 {
      %cst_26 = arith.constant 0.000000e+00 : f32
      %72 = vector.broadcast %cst_26 : f32 to vector<16x128xf32>
      %c0_27 = arith.constant 0 : index
      %c0_28 = arith.constant 0 : index
      %73 = vector.load %arg11[%c0_27, %c0_28] : memref<16x128xf32, #tpu.memory_space<vmem>>, vector<16x128xf32>
      tpu.vector_store %arg11[%c0_27, %c0_28], %72 {strides = array<i32>} : memref<16x128xf32, #tpu.memory_space<vmem>>, vector<16x128xf32>,
      %cst_29 = arith.constant 0.000000e+00 : f32
      %74 = vector.broadcast %cst_29 : f32 to vector<16x128xf32>
      %c0_30 = arith.constant 0 : index
      %c0_31 = arith.constant 0 : index
      %75 = vector.load %arg12[%c0_30, %c0_31] : memref<16x128xf32, #tpu.memory_space<vmem>>, vector<16x128xf32>
      tpu.vector_store %arg12[%c0_30, %c0_31], %74 {strides = array<i32>} : memref<16x128xf32, #tpu.memory_space<vmem>>, vector<16x128xf32>,
      %cst_32 = arith.constant 0.000000e+00 : f32
      %76 = vector.broadcast %cst_32 : f32 to vector<16x128xf32>
      %c0_33 = arith.constant 0 : index
      %c0_34 = arith.constant 0 : index
      %77 = vector.load %arg13[%c0_33, %c0_34] : memref<16x128xf32, #tpu.memory_space<vmem>>, vector<16x128xf32>
      tpu.vector_store %arg13[%c0_33, %c0_34], %76 {strides = array<i32>} : memref<16x128xf32, #tpu.memory_space<vmem>>, vector<16x128xf32>,
    } else {
    }
    %c0 = arith.constant 0 : index
    %c0_1 = arith.constant 0 : index
    %c0_2 = arith.constant 0 : index
    %c0_3 = arith.constant 0 : index
    %3 = vector.load %arg2[%c0, %c0_1, %c0_2, %c0_3] : memref<1x2x16x16xf32, #tpu.memory_space<vmem>>, vector<1x2x16x16xf32>
    %4 = vector.shape_cast %3 : vector<1x2x16x16xf32> to vector<2x16x16xf32>
    %5 = arith.truncf %4 : vector<2x16x16xf32> to vector<2x16x16xbf16>
    %c0_4 = arith.constant 0 : index
    %c0_5 = arith.constant 0 : index
    %c0_6 = arith.constant 0 : index
    %c0_7 = arith.constant 0 : index
    %6 = vector.load %arg3[%c0_4, %c0_5, %c0_6, %c0_7] : memref<1x2x16x16xf32, #tpu.memory_space<vmem>>, vector<1x2x16x16xf32>
    %7 = vector.shape_cast %6 : vector<1x2x16x16xf32> to vector<2x16x16xf32>
    %8 = arith.truncf %7 : vector<2x16x16xf32> to vector<2x16x16xbf16>
    %9 = tpu.concatenate %5, %8 in 0 : vector<2x16x16xbf16>, vector<2x16x16xbf16> -> vector<4x16x16xbf16>
    %10 = vector.shape_cast %9 : vector<4x16x16xbf16> to vector<64x16xbf16>
    %c0_8 = arith.constant 0 : index
    %c0_9 = arith.constant 0 : index
    %11 = vector.load %arg6[%c0_8, %c0_9] : memref<16x256xbf16, #tpu.memory_space<vmem>>, vector<16x256xbf16>
    %cst = arith.constant dense<0.000000e+00> : vector<64x256xf32>
    %12 = tpu.matmul %10, %11, %cst {dimension_numbers = #tpu.dot_dimension_numbers<[1], [0], [0], [1], [0, 0, 1, 1], [], []>} : vector<64x16xbf16>, vector<16x256xbf16>, vector<64x256xf32> -> vector<64x256xf32>
    %13 = arith.truncf %12 : vector<64x256xf32> to vector<64x256xbf16>
    %14 = vector.extract_strided_slice %13 {offsets = [0, 0], sizes = [64, 128], strides = [1, 1]} : vector<64x256xbf16> to vector<64x128xbf16>
    %15 = vector.extract_strided_slice %13 {offsets = [0, 128], sizes = [64, 128], strides = [1, 1]} : vector<64x256xbf16> to vector<64x128xbf16>
    %16 = vector.extract_strided_slice %14 {offsets = [0, 0], sizes = [16, 128], strides = [1, 1]} : vector<64x128xbf16> to vector<16x128xbf16>
    %17 = vector.extract_strided_slice %14 {offsets = [16, 0], sizes = [16, 128], strides = [1, 1]} : vector<64x128xbf16> to vector<16x128xbf16>
    %18 = vector.extract_strided_slice %14 {offsets = [32, 0], sizes = [16, 128], strides = [1, 1]} : vector<64x128xbf16> to vector<16x128xbf16>
    %19 = vector.extract_strided_slice %14 {offsets = [48, 0], sizes = [16, 128], strides = [1, 1]} : vector<64x128xbf16> to vector<16x128xbf16>
    %20 = tpu.concatenate %16, %17, %18, %19 in 1 : vector<16x128xbf16>, vector<16x128xbf16>, vector<16x128xbf16>, vector<16x128xbf16> -> vector<16x512xbf16>
    %21 = vector.extract_strided_slice %15 {offsets = [0, 0], sizes = [16, 128], strides = [1, 1]} : vector<64x128xbf16> to vector<16x128xbf16>
    %22 = vector.extract_strided_slice %15 {offsets = [16, 0], sizes = [16, 128], strides = [1, 1]} : vector<64x128xbf16> to vector<16x128xbf16>
    %23 = vector.extract_strided_slice %15 {offsets = [32, 0], sizes = [16, 128], strides = [1, 1]} : vector<64x128xbf16> to vector<16x128xbf16>
    %24 = vector.extract_strided_slice %15 {offsets = [48, 0], sizes = [16, 128], strides = [1, 1]} : vector<64x128xbf16> to vector<16x128xbf16>
    %25 = tpu.concatenate %21, %22, %23, %24 in 1 : vector<16x128xbf16>, vector<16x128xbf16>, vector<16x128xbf16>, vector<16x128xbf16> -> vector<16x512xbf16>
    %26 = tpu.concatenate %20, %25 in 0 : vector<16x512xbf16>, vector<16x512xbf16> -> vector<32x512xbf16>
    %c0_10 = arith.constant 0 : index
    %c0_11 = arith.constant 0 : index
    %27 = vector.load %arg7[%c0_10, %c0_11] : memref<32x32xbf16, #tpu.memory_space<vmem>>, vector<32x32xbf16>
    %cst_12 = arith.constant dense<0.000000e+00> : vector<32x512xf32>
    %28 = tpu.matmul %27, %26, %cst_12 {dimension_numbers = #tpu.dot_dimension_numbers<[1], [0], [0], [1], [0, 0, 1, 1], [], []>} : vector<32x32xbf16>, vector<32x512xbf16>, vector<32x512xf32> -> vector<32x512xf32>
    %29 = vector.extract_strided_slice %28 {offsets = [0, 0], sizes = [16, 512], strides = [1, 1]} : vector<32x512xf32> to vector<16x512xf32>
    %30 = vector.extract_strided_slice %28 {offsets = [16, 0], sizes = [16, 512], strides = [1, 1]} : vector<32x512xf32> to vector<16x512xf32>
    %c0_13 = arith.constant 0 : index
    %c0_14 = arith.constant 0 : index
    %31 = vector.load %arg11[%c0_13, %c0_14] : memref<16x128xf32, #tpu.memory_space<vmem>>, vector<16x128xf32>
    %c0_15 = arith.constant 0 : index
    %c0_16 = arith.constant 0 : index
    %32 = vector.load %arg12[%c0_15, %c0_16] : memref<16x128xf32, #tpu.memory_space<vmem>>, vector<16x128xf32>
    %c0_17 = arith.constant 0 : index
    %c0_18 = arith.constant 0 : index
    %33 = vector.load %arg13[%c0_17, %c0_18] : memref<16x128xf32, #tpu.memory_space<vmem>>, vector<16x128xf32>
    %34 = vector.extract_strided_slice %29 {offsets = [0, 0], sizes = [16, 128], strides = [1, 1]} : vector<16x512xf32> to vector<16x128xf32>
    %35 = vector.extract_strided_slice %30 {offsets = [0, 0], sizes = [16, 128], strides = [1, 1]} : vector<16x512xf32> to vector<16x128xf32>
    %36 = vector.extract_strided_slice %29 {offsets = [0, 256], sizes = [16, 128], strides = [1, 1]} : vector<16x512xf32> to vector<16x128xf32>
    %37 = vector.extract_strided_slice %30 {offsets = [0, 256], sizes = [16, 128], strides = [1, 1]} : vector<16x512xf32> to vector<16x128xf32>
    %38 = arith.mulf %34, %34 : vector<16x128xf32>
    %39 = arith.mulf %35, %35 : vector<16x128xf32>
    %40 = arith.addf %38, %39 : vector<16x128xf32>
    %41 = arith.addf %31, %40 : vector<16x128xf32>
    %42 = arith.mulf %36, %34 : vector<16x128xf32>
    %43 = arith.mulf %37, %35 : vector<16x128xf32>
    %44 = arith.addf %42, %43 : vector<16x128xf32>
    %45 = arith.addf %32, %44 : vector<16x128xf32>
    %46 = arith.mulf %37, %34 : vector<16x128xf32>
    %47 = arith.mulf %36, %35 : vector<16x128xf32>
    %48 = arith.subf %46, %47 : vector<16x128xf32>
    %49 = arith.addf %33, %48 : vector<16x128xf32>
    %50 = vector.extract_strided_slice %29 {offsets = [0, 128], sizes = [16, 128], strides = [1, 1]} : vector<16x512xf32> to vector<16x128xf32>
    %51 = vector.extract_strided_slice %30 {offsets = [0, 128], sizes = [16, 128], strides = [1, 1]} : vector<16x512xf32> to vector<16x128xf32>
    %52 = vector.extract_strided_slice %29 {offsets = [0, 384], sizes = [16, 128], strides = [1, 1]} : vector<16x512xf32> to vector<16x128xf32>
    %53 = vector.extract_strided_slice %30 {offsets = [0, 384], sizes = [16, 128], strides = [1, 1]} : vector<16x512xf32> to vector<16x128xf32>
    %54 = arith.mulf %50, %50 : vector<16x128xf32>
    %55 = arith.mulf %51, %51 : vector<16x128xf32>
    %56 = arith.addf %54, %55 : vector<16x128xf32>
    %57 = arith.addf %41, %56 : vector<16x128xf32>
    %58 = arith.mulf %52, %50 : vector<16x128xf32>
    %59 = arith.mulf %53, %51 : vector<16x128xf32>
    %60 = arith.addf %58, %59 : vector<16x128xf32>
    %61 = arith.addf %45, %60 : vector<16x128xf32>
    %62 = arith.mulf %53, %50 : vector<16x128xf32>
    %63 = arith.mulf %52, %51 : vector<16x128xf32>
    %64 = arith.subf %62, %63 : vector<16x128xf32>
    %65 = arith.addf %49, %64 : vector<16x128xf32>
    %c0_19 = arith.constant 0 : index
    %c0_20 = arith.constant 0 : index
    %66 = vector.load %arg11[%c0_19, %c0_20] : memref<16x128xf32, #tpu.memory_space<vmem>>, vector<16x128xf32>
    tpu.vector_store %arg11[%c0_19, %c0_20], %57 {strides = array<i32>} : memref<16x128xf32, #tpu.memory_space<vmem>>, vector<16x128xf32>,
    %c0_21 = arith.constant 0 : index
    %c0_22 = arith.constant 0 : index
    %67 = vector.load %arg12[%c0_21, %c0_22] : memref<16x128xf32, #tpu.memory_space<vmem>>, vector<16x128xf32>
    tpu.vector_store %arg12[%c0_21, %c0_22], %61 {strides = array<i32>} : memref<16x128xf32, #tpu.memory_space<vmem>>, vector<16x128xf32>,
    %c0_23 = arith.constant 0 : index
    %c0_24 = arith.constant 0 : index
    %68 = vector.load %arg13[%c0_23, %c0_24] : memref<16x128xf32, #tpu.memory_space<vmem>>, vector<16x128xf32>
    tpu.vector_store %arg13[%c0_23, %c0_24], %65 {strides = array<i32>} : memref<16x128xf32, #tpu.memory_space<vmem>>, vector<16x128xf32>,
    %c1_i32 = arith.constant 1 : i32
    %69 = arith.cmpi eq, %arg1, %c1_i32 : i32
    %70 = arith.extui %69 : i1 to i32
    %c0_i32_25 = arith.constant 0 : i32
    %71 = arith.cmpi ne, %70, %c0_i32_25 : i32
    scf.if %71 {
      %c0_26 = arith.constant 0 : index
      %c0_27 = arith.constant 0 : index
      %72 = vector.load %arg11[%c0_26, %c0_27] : memref<16x128xf32, #tpu.memory_space<vmem>>, vector<16x128xf32>
      %cst_28 = arith.constant 9.99999974E-5 : f32
      %73 = vector.broadcast %cst_28 : f32 to vector<16x128xf32>
      %74 = arith.addf %72, %73 : vector<16x128xf32>
      %75 = tpu.reciprocal %74 {approx = true} : vector<16x128xf32> -> vector<16x128xf32>
      %c0_29 = arith.constant 0 : index
      %c0_30 = arith.constant 0 : index
      %76 = vector.load %arg4[%c0_29, %c0_30] : memref<16x128xf32, #tpu.memory_space<vmem>>, vector<16x128xf32>
      %77 = arith.mulf %76, %75 : vector<16x128xf32>
      %c0_31 = arith.constant 0 : index
      %c0_32 = arith.constant 0 : index
      %78 = vector.load %arg5[%c0_31, %c0_32] : memref<16x128xf32, #tpu.memory_space<vmem>>, vector<16x128xf32>
      %79 = arith.mulf %78, %75 : vector<16x128xf32>
      %c0_33 = arith.constant 0 : index
      %c0_34 = arith.constant 0 : index
      %80 = vector.load %arg12[%c0_33, %c0_34] : memref<16x128xf32, #tpu.memory_space<vmem>>, vector<16x128xf32>
      %81 = arith.mulf %80, %77 : vector<16x128xf32>
      %c0_35 = arith.constant 0 : index
      %c0_36 = arith.constant 0 : index
      %82 = vector.load %arg13[%c0_35, %c0_36] : memref<16x128xf32, #tpu.memory_space<vmem>>, vector<16x128xf32>
      %83 = arith.mulf %82, %79 : vector<16x128xf32>
      %84 = arith.subf %81, %83 : vector<16x128xf32>
      %c0_37 = arith.constant 0 : index
      %c0_38 = arith.constant 0 : index
      %85 = vector.load %arg12[%c0_37, %c0_38] : memref<16x128xf32, #tpu.memory_space<vmem>>, vector<16x128xf32>
      %86 = arith.mulf %85, %79 : vector<16x128xf32>
      %c0_39 = arith.constant 0 : index
      %c0_40 = arith.constant 0 : index
      %87 = vector.load %arg13[%c0_39, %c0_40] : memref<16x128xf32, #tpu.memory_space<vmem>>, vector<16x128xf32>
      %88 = arith.mulf %87, %77 : vector<16x128xf32>
      %89 = arith.addf %86, %88 : vector<16x128xf32>
      %90 = tpu.concatenate %84, %89 in 0 : vector<16x128xf32>, vector<16x128xf32> -> vector<32x128xf32>
      %91 = arith.truncf %90 : vector<32x128xf32> to vector<32x128xbf16>
      %c0_41 = arith.constant 0 : index
      %c0_42 = arith.constant 0 : index
      %92 = vector.load %arg8[%c0_41, %c0_42] : memref<32x32xbf16, #tpu.memory_space<vmem>>, vector<32x32xbf16>
      %cst_43 = arith.constant dense<0.000000e+00> : vector<32x128xf32>
      %93 = tpu.matmul %92, %91, %cst_43 {dimension_numbers = #tpu.dot_dimension_numbers<[1], [0], [0], [1], [0, 0, 1, 1], [], []>} : vector<32x32xbf16>, vector<32x128xbf16>, vector<32x128xf32> -> vector<32x128xf32>
      %94 = vector.extract_strided_slice %93 {offsets = [0, 0], sizes = [16, 128], strides = [1, 1]} : vector<32x128xf32> to vector<16x128xf32>
      %95 = vector.extract_strided_slice %93 {offsets = [16, 0], sizes = [16, 128], strides = [1, 1]} : vector<32x128xf32> to vector<16x128xf32>
      %96 = tpu.concatenate %94, %95 in 1 : vector<16x128xf32>, vector<16x128xf32> -> vector<16x256xf32>
      %97 = arith.truncf %96 : vector<16x256xf32> to vector<16x256xbf16>
      %c0_44 = arith.constant 0 : index
      %c0_45 = arith.constant 0 : index
      %98 = vector.load %arg9[%c0_44, %c0_45] : memref<256x128xbf16, #tpu.memory_space<vmem>>, vector<256x128xbf16>
      %cst_46 = arith.constant dense<0.000000e+00> : vector<16x128xf32>
      %99 = tpu.matmul %97, %98, %cst_46 {dimension_numbers = #tpu.dot_dimension_numbers<[1], [0], [0], [1], [0, 0, 1, 1], [], []>} : vector<16x256xbf16>, vector<256x128xbf16>, vector<16x128xf32> -> vector<16x128xf32>
      %c0_47 = arith.constant 0 : index
      %c0_48 = arith.constant 0 : index
      %c0_49 = arith.constant 0 : index
      %100 = vector.load %arg10[%c0_47, %c0_48, %c0_49] : memref<1x16x128xf32, #tpu.memory_space<vmem>>, vector<1x16x128xf32>
      %101 = vector.shape_cast %100 : vector<1x16x128xf32> to vector<16x128xf32>
      %102 = vector.shape_cast %99 : vector<16x128xf32> to vector<1x16x128xf32>
      tpu.vector_store %arg10[%c0_47, %c0_48, %c0_49], %102 {strides = array<i32>} : memref<1x16x128xf32, #tpu.memory_space<vmem>>, vector<1x16x128xf32>,
    } else {
    }
    return
  }
  func.func @transform_0(%arg0: i32, %arg1: i32) -> (i32, i32, i32, i32) {
    %c0_i32 = arith.constant 0 : i32
    %c0_i32_0 = arith.constant 0 : i32
    %c0_i32_1 = arith.constant 0 : i32
    return %arg0, %arg1, %c0_i32, %c0_i32_0 : i32, i32, i32, i32
  }
  func.func @transform_1(%arg0: i32, %arg1: i32) -> (i32, i32, i32, i32) {
    %c0_i32 = arith.constant 0 : i32
    %c0_i32_0 = arith.constant 0 : i32
    %c0_i32_1 = arith.constant 0 : i32
    return %arg0, %arg1, %c0_i32, %c0_i32_0 : i32, i32, i32, i32
  }
  func.func @transform_2(%arg0: i32, %arg1: i32) -> (i32, i32) {
    %c0_i32 = arith.constant 0 : i32
    %c0_i32_0 = arith.constant 0 : i32
    %c0_i32_1 = arith.constant 0 : i32
    return %c0_i32, %c0_i32_0 : i32, i32
  }
  func.func @transform_3(%arg0: i32, %arg1: i32) -> (i32, i32) {
    %c0_i32 = arith.constant 0 : i32
    %c0_i32_0 = arith.constant 0 : i32
    %c0_i32_1 = arith.constant 0 : i32
    return %c0_i32, %c0_i32_0 : i32, i32
  }
  func.func @transform_4(%arg0: i32, %arg1: i32) -> (i32, i32) {
    %c0_i32 = arith.constant 0 : i32
    %c0_i32_0 = arith.constant 0 : i32
    %c0_i32_1 = arith.constant 0 : i32
    return %c0_i32, %c0_i32_0 : i32, i32
  }
  func.func @transform_5(%arg0: i32, %arg1: i32) -> (i32, i32) {
    %c0_i32 = arith.constant 0 : i32
    %c0_i32_0 = arith.constant 0 : i32
    %c0_i32_1 = arith.constant 0 : i32
    return %c0_i32, %c0_i32_0 : i32, i32
  }
  func.func @transform_6(%arg0: i32, %arg1: i32) -> (i32, i32) {
    %c0_i32 = arith.constant 0 : i32
    %c0_i32_0 = arith.constant 0 : i32
    %c0_i32_1 = arith.constant 0 : i32
    return %c0_i32, %c0_i32_0 : i32, i32
  }
  func.func @transform_7(%arg0: i32, %arg1: i32) -> (i32, i32) {
    %c0_i32 = arith.constant 0 : i32
    %c0_i32_0 = arith.constant 0 : i32
    %c0_i32_1 = arith.constant 0 : i32
    return %c0_i32, %c0_i32_0 : i32, i32
  }
  func.func @transform_8(%arg0: i32, %arg1: i32) -> (i32, i32, i32) {
    %c0_i32 = arith.constant 0 : i32
    %c0_i32_0 = arith.constant 0 : i32
    %c0_i32_1 = arith.constant 0 : i32
    return %arg0, %c0_i32, %c0_i32_0 : i32, i32, i32
  }
}

</mosaic_0001>

<bundles_post_ra>
// kernel: tpu_custom_call.1
= control target key start
LH: loop header
LB: loop body
LE: loop exit
PB: predicated region body
PF: predicated region fallthrough
CT: control target
= control target key end

     0   :  { %s2414_s0 = inlined_call_operand.hbm [shape: f32[2,4,16,16], index: 0, kind: input, shape index: {}]   ;;  %s2415_s1 = inlined_call_operand.hbm [shape: f32[2,4,16,16], index: 1, kind: input, shape index: {}]   ;;  %s2416_s2 = inlined_call_operand.hbm [shape: f32[16,128], index: 2, kind: input, shape index: {}]   ;;  %s2417_s3 = inlined_call_operand.hbm [shape: f32[16,128], index: 3, kind: input, shape index: {}]   ;;  %s2418_s4 = inlined_call_operand.hbm [shape: bf16[16,256], index: 4, kind: input, shape index: {}]   ;;  %s2419_s5 = inlined_call_operand.vmem [shape: bf16[32,32], index: 5, kind: input, shape index: {}]   ;;  %s2420_s6 = inlined_call_operand.hbm [shape: bf16[32,32], index: 6, kind: input, shape index: {}]   ;;  %s2421_s7 = inlined_call_operand.hbm [shape: bf16[256,128], index: 7, kind: input, shape index: {}]   ;;  %s2422_s8 = inlined_call_operand.hbm [shape: f32[2,16,128], index: 8, kind: output, shape index: {}]  }
   0x1   :  { %2440 = sst [smem:[#allocation31_spill]] %s2414_s0 }
   0x2   :  { %2441 = sst [smem:[#allocation32_spill]] %s2415_s1 }
   0x3   :  { %2442 = sst [smem:[#allocation33_spill]] %s2416_s2 }
   0x4   :  { %2443 = sst [smem:[#allocation34_spill]] %s2417_s3 }
   0x5   :  { %2444 = sst [smem:[#allocation35_spill]] %s2418_s4 }
   0x6   :  { %2445 = sst [smem:[#allocation36_spill]] %s2419_s5 }
   0x7   :  { %2446 = sst [smem:[#allocation37_spill]] %s2420_s6 }
   0x8   :  { %2447 = sst [smem:[#allocation38_spill]] %s2421_s7 }
   0x9   :  { %2448 = sst [smem:[#allocation39_spill]] %s2422_s8 }
   0xa   :  { %13 = vsyncpa [#allocation6], 0 }
   0xb   :  { %15 = vsyncpa [#allocation6 + $0x1], 0 }
   0xc   :  { %16 = vsyncpa [#allocation9], 0 }
   0xd   :  { %18 = vsyncpa [#allocation9 + $0x1], 0 }
   0xe   :  { %19 = vsyncpa [#allocation12], 0 }
   0xf   :  { %20 = vsyncpa [#allocation15], 0 }
  0x10   :  { %21 = vsyncpa [#allocation7], 0 }
  0x11   :  { %23 = vsyncpa [#allocation7 + $0x1], 0  ;;  %s1926_s27 = smov 0   ;;  %s1928_s28 = smov 0  }
  0x12   :  { %s1930_s29 = smov 0   ;;  %s1932_s30 = smov 0  }
  0x13   :  { %s1934_s9 = smov 0   ;;  %s1936_s10 = smov 0  }
  0x14   :  { %s1938_s11 = smov 0   ;;  %s1940_s12 = smov 0  }
  0x15   :  { %s1942_s13 = smov 0   ;;  %s1944_s14 = smov 0  }
  0x16   :  { %s1946_s15 = smov 0  }
  0x17 LB: > { %2449 = sst [smem:[#allocation24_spill]] %s1847_s11  ;;  %s1982_s16 = sadd.s32 4294967295, %s1863_s15   ;;  %s1863_s15 = sphi %s1946_s15, %s29_s15   ;;  %s1859_s14 = sphi %s1944_s14, %s2494_s14   ;;  %s1855_s13 = sphi %s1942_s13, %s2493_s13   ;;  %s1851_s12 = sphi %s1940_s12, %s2492_s12   ;;  %s1847_s11 = sphi %s1938_s11, %s2491_s11   ;;  %s1843_s10 = sphi %s1936_s10, %s2500_s10   ;;  %s1839_s9 = sphi %s1934_s9, %s2499_s9   ;;  %s1835_s30 = sphi %s1932_s30, %s2498_s30   ;;  %s1831_s29 = sphi %s1930_s29, %s2497_s29   ;;  %s1827_s28 = sphi %s1928_s28, %s2496_s28   ;;  %s1823_s27 = sphi %s1926_s27, %s2495_s27  }
  0x18   : > { %2450 = sst [smem:[#allocation25_spill]] %s1851_s12  ;;  %p1230_p0 = scmp.ge.s32.totalorder %s1863_s15, 1 }
  0x19   : > { %2451 = sst [smem:[#allocation26_spill]] %s1855_s13  ;;  %p2432_p1 = scmp.eq.s32.totalorder %s1982_s16, 0 }
  0x1a   : > { %2452 = sst [smem:[#allocation27_spill]] %s1859_s14  ;;  %p254_p3 = scmp.lt.s32.totalorder %s1863_s15, 5 }
  0x1b   : > { %s1865_s18 = smov [#allocation10]   ;;  %s1866_s21 = smov [#allocation11]  }
  0x1c   : > { %p1988_p4 = pnand %p1230_p0, %p254_p3  ;;  %s266_s19 = sshll.u32 %s1865_s18, 4  ;;  %s1992_s19 = int_to_ptr.vmem [resolvable:$true] %s266_s19 }
  0x1d   : > { %s279_s22 = sshll.u32 %s1866_s21, 4  ;;  %s1867_s23 = smov [#allocation14]   ;;  %s2002_s22 = int_to_ptr.vmem [resolvable:$true] %s279_s22 }
  0x1e   : > { %s2453_s17 = scalar_select %p1988_p4, 1, 0 }
  0x1f   : > { %p1358_p5 = pneg %p1988_p4  ;;  %s308_s24 = sshll.u32 %s1867_s23, 4  ;;  %s2004_s24 = int_to_ptr.vmem [resolvable:$true] %s308_s24 }
  0x20   : > { %2454 = sst [smem:[#allocation28_spill]] %s2453_s17  ;;  %s2456_s2 = sld [smem:[#allocation33_spill]] }
  0x21   : > { %p1998_p6 = pnand %p1358_p5, %p2432_p1 }
  0x23   : > { %p2014_p8 = pneg %p1998_p6 }
  0x26   : > { %s1525_s18 = scalar_lea.hbm %s2456_s2, 256 }
  0x27   : > { %p1526_p7 = scmp.ne.s32.totalorder %s2456_s2, %s1525_s18  ;;  %p1532_p11 = scmp.lt.u32.totalorder %s1525_s18, %s2456_s2 }
  0x29   : > { %p1528_p9 = pnand %p2014_p8, %p1526_p7 }
  0x2b   : > { %p1529_p10 = pneg %p1528_p9 }
  0x2d   : > { %p1534_p12 = pnand %p1532_p11, %p1529_p10 }
  0x2f   : > { %1537 = shalt.err (!%p1534_p12)
}
  0x30   : > { %s1538_s8 = scalar_lea.vmem %s1992_s19, 256  ;;  %p1546_p5 = scmp.lt.s32.totalorder %s1992_s19, %s1992_s19 }
  0x31   : > { %p1539_p13 = scmp.ne.s32.totalorder %s1992_s19, %s1538_s8  ;;  %p1547_p2 = scmp.lt.s32.totalorder %s1538_s8, %s1538_s8 }
  0x33   : > { %p1541_p0 = pnand %p1539_p13, %p2014_p8  ;;  %p1548_p7 = por %p1547_p2, %p1546_p5 }
  0x35   : > { %p1542_p3 = pneg %p1541_p0 }
  0x37   : > { %p1549_p9 = pnand %p1548_p7, %p1542_p3 }
  0x39   : > { %1552 = shalt.err (!%p1549_p9)
}
  0x3a   : > { %s2428_s12 = smov 128   ;;  %s2430_s25 = smov 8  }
  0x3b   : > { %1361 = dma.hbm_to_vmem [thread:$0]  (!%p1998_p6), %s2456_s2, 256, %s1992_s19, [#allocation9], %s2428_s12, %s2428_s12, %s2430_s25  }
  0x3c   : > { %s2458_s3 = sld [smem:[#allocation34_spill]] }
  0x42   : > { %s1553_s8 = scalar_lea.hbm %s2458_s3, 256 }
  0x43   : > { %p1554_p2 = scmp.ne.s32.totalorder %s2458_s3, %s1553_s8  ;;  %p1560_p12 = scmp.lt.u32.totalorder %s1553_s8, %s2458_s3 }
  0x45   : > { %p1556_p10 = pnand %p1554_p2, %p2014_p8 }
  0x47   : > { %p1557_p11 = pneg %p1556_p10 }
  0x49   : > { %p1562_p13 = pnand %p1560_p12, %p1557_p11 }
  0x4b   : > { %1565 = shalt.err (!%p1562_p13)
}
  0x4c   : > { %s1566_s19 = scalar_lea.vmem %s2002_s22, 256  ;;  %p1574_p7 = scmp.lt.s32.totalorder %s2002_s22, %s2002_s22 }
  0x4d   : > { %p1567_p0 = scmp.ne.s32.totalorder %s2002_s22, %s1566_s19  ;;  %p1575_p9 = scmp.lt.s32.totalorder %s1566_s19, %s1566_s19 }
  0x4f   : > { %p1569_p3 = pnand %p1567_p0, %p2014_p8  ;;  %p1576_p2 = por %p1575_p9, %p1574_p7 }
  0x51   : > { %p1570_p5 = pneg %p1569_p3 }
  0x53   : > { %p1577_p10 = pnand %p1576_p2, %p1570_p5 }
  0x55   : > { %1580 = shalt.err (!%p1577_p10)
}
  0x56   : > { %1364 = dma.hbm_to_vmem [thread:$0]  (!%p1998_p6), %s2458_s3, 256, %s2002_s22, [#allocation12], %s2428_s12, %s2428_s12, %s2430_s25  }
  0x57   : > { %s2459_s6 = sld [smem:[#allocation37_spill]] }
  0x5d   : > { %s1581_s26 = scalar_lea.hbm %s2459_s6, 256 }
  0x5e   : > { %p1582_p11 = scmp.ne.s32.totalorder %s2459_s6, %s1581_s26  ;;  %p1588_p0 = scmp.lt.u32.totalorder %s1581_s26, %s2459_s6 }
  0x60   : > { %p1584_p12 = pnand %p1582_p11, %p2014_p8 }
  0x62   : > { %p1585_p13 = pneg %p1584_p12 }
  0x64   : > { %p1590_p3 = pnand %p1588_p0, %p1585_p13 }
  0x66   : > { %1593 = shalt.err (!%p1590_p3)
}
  0x67   : > { %s1594_s22 = scalar_lea.vmem %s2004_s24, 256  ;;  %p1602_p2 = scmp.lt.s32.totalorder %s2004_s24, %s2004_s24 }
  0x68   : > { %p1595_p5 = scmp.ne.s32.totalorder %s2004_s24, %s1594_s22  ;;  %p1603_p10 = scmp.lt.s32.totalorder %s1594_s22, %s1594_s22 }
  0x6a   : > { %p1597_p7 = pnand %p1595_p5, %p2014_p8  ;;  %p1604_p11 = por %p1603_p10, %p1602_p2 }
  0x6c   : > { %p1598_p9 = pneg %p1597_p7 }
  0x6e   : > { %p1605_p12 = pnand %p1604_p11, %p1598_p9 }
  0x70   : > { %1608 = shalt.err (!%p1605_p12)
}
  0x71   : > { %s2434_s19 = smov 64   ;;  %s1871_s0 = smov 4  }
  0x72   : > { %1370 = dma.hbm_to_vmem [thread:$0]  (!%p1998_p6), %s2459_s6, 256, %s2004_s24, [#allocation15], %s2434_s19, %s2434_s19, %s1871_s0  }
  0x73   : > { %s1872_s17 = smov [#allocation13]   ;;  %s1873_s18 = smov [#allocation16]  }
  0x74   : > { %s292_s26 = sshll.u32 %s1872_s17, 4  ;;  %s321_s21 = sshll.u32 %s1873_s18, 4  ;;  %s293_s26 = int_to_ptr.vmem [resolvable:$true] %s292_s26  ;;  %s2090_s21 = int_to_ptr.vmem [resolvable:$true] %s321_s21 }
  0x75   : > { %s2460_s4 = sld [smem:[#allocation35_spill]] }
  0x7b   : > { %s1609_s22 = scalar_lea.hbm %s2460_s4, 256 }
  0x7c   : > { %p1610_p13 = scmp.ne.s32.totalorder %s2460_s4, %s1609_s22  ;;  %p1616_p5 = scmp.lt.u32.totalorder %s1609_s22, %s2460_s4 }
  0x7e   : > { %p1612_p0 = pnand %p1610_p13, %p2014_p8 }
  0x80   : > { %p1613_p3 = pneg %p1612_p0 }
  0x82   : > { %p1618_p7 = pnand %p1616_p5, %p1613_p3 }
  0x84   : > { %1621 = shalt.err (!%p1618_p7)
}
  0x85   : > { %s1622_s11 = scalar_lea.vmem %s293_s26, 256  ;;  %p1630_p11 = scmp.lt.s32.totalorder %s293_s26, %s293_s26 }
  0x86   : > { %p1623_p9 = scmp.ne.s32.totalorder %s293_s26, %s1622_s11  ;;  %p1631_p12 = scmp.lt.s32.totalorder %s1622_s11, %s1622_s11 }
  0x88   : > { %p1625_p2 = pnand %p1623_p9, %p2014_p8  ;;  %p1632_p1 = por %p1631_p12, %p1630_p11 }
  0x8a   : > { %p1626_p10 = pneg %p1625_p2 }
  0x8c   : > { %p1633_p4 = pnand %p1632_p1, %p1626_p10 }
  0x8e   : > { %1636 = shalt.err (!%p1633_p4)
}
  0x8f   : > { %s2461_s12 = smov 8   ;;  %s2462_s25 = smov 128  }
  0x90   : > { %1367 = dma.hbm_to_vmem [thread:$0]  (!%p1998_p6), %s2460_s4, 256, %s293_s26, [#allocation12], %s2462_s25, %s2462_s25, %s2461_s12  }
  0x91   : > { %s2463_s7 = sld [smem:[#allocation38_spill]] }
  0x97   : > { %s1637_s22 = scalar_lea.hbm %s2463_s7, 2048 }
  0x98   : > { %p1638_p13 = scmp.ne.s32.totalorder %s2463_s7, %s1637_s22  ;;  %p1644_p0 = scmp.lt.u32.totalorder %s1637_s22, %s2463_s7 }
  0x9a   : > { %p1640_p1 = pnand %p1638_p13, %p2014_p8 }
  0x9c   : > { %p1641_p4 = pneg %p1640_p1 }
  0x9e   : > { %p1646_p3 = pnand %p1644_p0, %p1641_p4 }
  0xa0   : > { %1649 = shalt.err (!%p1646_p3)
}
  0xa1   : > { %s1650_s26 = scalar_lea.vmem %s2090_s21, 2048  ;;  %p1658_p2 = scmp.lt.s32.totalorder %s2090_s21, %s2090_s21 }
  0xa2   : > { %p1651_p5 = scmp.ne.s32.totalorder %s2090_s21, %s1650_s26  ;;  %p1659_p10 = scmp.lt.s32.totalorder %s1650_s26, %s1650_s26 }
  0xa4   : > { %p1653_p7 = pnand %p1651_p5, %p2014_p8  ;;  %p1660_p11 = por %p1659_p10, %p1658_p2 }
  0xa6   : > { %p1654_p9 = pneg %p1653_p7 }
  0xa8   : > { %p1661_p12 = pnand %p1660_p11, %p1654_p9 }
  0xaa   : > { %1664 = shalt.err (!%p1661_p12)
}
  0xab   : > { %s2464_s19 = smov 64   ;;  %s1229_s5 = sadd.s32 4294967294, %s1863_s15  }
  0xac   : > { %1373 = dma.hbm_to_vmem [thread:$0]  (!%p1998_p6), %s2463_s7, 2048, %s2090_s21, [#allocation15], %s2464_s19, %s2464_s19, %s1871_s0  }
  0xad   : > { %s38_s20 = sadd.s32 1, %s1855_s13  ;;  %s41_s23 = sadd.s32 1, %s1859_s14 }
  0xae   : > { %p39_p8 = scmp.ge.s32.totalorder %s38_s20, 2  ;;  %s50_s8 = sadd.s32 1, %s1843_s10 }
  0xaf   : > { %p57_p13 = scmp.ne.s32.totalorder %s1843_s10, %s1839_s9  ;;  %p58_p6 = scmp.eq.s32.totalorder %s1863_s15, 0 }
  0xb0   : > { %s2502_s20 = smov (%p39_p8, %s38_s20), 0  ;;  %s2504_s23 = smov (!%p39_p8, %s41_s23), %s1859_s14 }
  0xb1   : > { %2465 = sst [smem:[#allocation29_spill]] %s2502_s20  ;;  %s46_s22 = ssub.s32 %s1855_s13, %s2502_s20 }
  0xb2   : > { %p43_p1 = scmp.ge.s32.totalorder %s2504_s23, 2  ;;  %p63_p4 = scmp.ne.s32.totalorder %s1839_s9, %s1835_s30 }
  0xb3   : > { %p2153_p0 = por %p58_p6, %p57_p13  ;;  %s230_s21 = sadd.s32 1, %s1831_s29 }
  0xb4   : > { %s2506_s23 = smov (%p43_p1, %s2504_s23), 0  ;;  %p2468_p3 = scmp.eq.s32.totalorder %s1982_s16, 0 }
  0xb5   : > { %2467 = sst [smem:[#allocation30_spill]] %s2506_s23  ;;  %p240_p7 = scmp.ne.s32.totalorder %s1831_s29, %s1827_s28 }
  0xb6   : > { %p2162_p5 = por %p2468_p3, %p63_p4  ;;  %s45_s24 = ssub.s32 %s1859_s14, %s2506_s23 }
  0xb7   : > { %p246_p9 = scmp.ne.s32.totalorder %s1827_s28, %s1823_s27  ;;  %s47_s30 = sor.u32 %s46_s22, %s45_s24 }
  0xb8   : > { %p228_p2 = scmp.eq.s32.totalorder %s45_s24, 0  ;;  %p48_p10 = scmp.eq.s32.totalorder %s47_s30, 0 }
  0xb9   : > { %p2470_p11 = scmp.eq.s32.totalorder %s1982_s16, 3  ;;  %p247_p8 = scmp.eq.s32.totalorder %s1229_s5, 3 }
  0xba   : > { %s2179_s26 = scalar_select %p228_p2, %s1831_s29, %s230_s21  }
  0xbb   : > { %p2174_p12 = por %p2470_p11, %p240_p7  ;;  %p1390_p13 = scmp.lt.s32.totalorder %s1863_s15, 4 }
  0xbc   : > { %s2182_s19 = scalar_select %p48_p10, %s1843_s10, %s50_s8  }
  0xbd   : > { %s2471_s11 = scalar_select %p2174_p12, 1, 0 }
  0xbe   : > { %s335_s17 = sand.u32 1, %s1843_s10   ;;  %s1295_s18 = sshll.u32 %s1855_s13, 2 }
  0xbf   : > { %p2187_p6 = por %p247_p8, %p246_p9  ;;  %s1237_s22 = sshll.u32 %s335_s17, 5 }
  0xc0   : > { %s1240_s24 = sshll.u32 %s1859_s14, 3  ;;  %s339_s4 = scalar_lea.vmem [#allocation5], %s1237_s22 }
  0xc1   : > { %s2472_s2 = scalar_select %p2187_p6, 1, 0 }
  0xc2   : > { %s346_s30 = sadd.s32 %s1295_s18, %s1240_s24  ;;  %s349_s6 = sshll.u32 %s339_s4, 4  ;;  %s2197_s6 = int_to_ptr.vmem [resolvable:$true] %s349_s6 }
  0xc3   : > { %s1241_s3 = sshll.u32 %s346_s30, 7  ;;  %s2473_s21 = sld [smem:[#allocation31_spill]] }
  0xc4   : > { %p2201_p1 = pnand %p1390_p13, %p2153_p0  ;;  %s2475_s24 = sld [smem:[#allocation32_spill]] }
  0xc5   : > { %s363_s7 = scalar_lea.vmem [#allocation8], %s1237_s22  ;;  %s2212_s30 = scalar_lea.sflag [#allocation6], %s335_s17 }
  0xc6   : > { %s373_s23 = sshll.u32 %s363_s7, 4  ;;  %p1667_p0 = pneg %p2201_p1  ;;  %s2210_s23 = int_to_ptr.vmem [resolvable:$true] %s373_s23 }
  0xc9   : > { %s2195_s20 = scalar_lea.hbm %s2473_s21, %s1241_s3  ;;  %s1670_s18 = scalar_lea.hbm %s2473_s21, 2048 }
  0xca   : > { %s2208_s4 = scalar_lea.hbm %s2475_s24, %s1241_s3  ;;  %s1665_s14 = scalar_lea.hbm %s2195_s20, 512 }
  0xcb   : > { %p1666_p4 = scmp.ne.s32.totalorder %s2195_s20, %s1665_s14  ;;  %p1671_p9 = scmp.lt.u32.totalorder %s2195_s20, %s2473_s21 }
  0xcc   : > { %p1672_p2 = scmp.lt.u32.totalorder %s1670_s18, %s1665_s14  ;;  %p1674_p11 = scmp.lt.u32.totalorder %s1665_s14, %s2195_s20 }
  0xcd   : > { %p1668_p3 = pnand %p1667_p0, %p1666_p4 }
  0xce   : > { %p1673_p10 = por %p1672_p2, %p1671_p9 }
  0xcf   : > { %p1669_p7 = pneg %p1668_p3 }
  0xd0   : > { %p1675_p8 = por %p1674_p11, %p1673_p10 }
  0xd2   : > { %p1676_p13 = pnand %p1675_p8, %p1669_p7 }
  0xd4   : > { %1679 = shalt.err (!%p1676_p13)
}
  0xd5   : > { %s1680_s17 = scalar_lea.vmem %s2197_s6, 512  ;;  %s1874_s22 = smov [#allocation5]  }
  0xd6   : > { %p1681_p4 = scmp.ne.s32.totalorder %s2197_s6, %s1680_s17  ;;  %s1685_s7 = sshll.u32 %s1874_s22, 4  ;;  %s1686_s7 = int_to_ptr.vmem [resolvable:$false] %s1685_s7 }
  0xd7   : > { %s1687_s13 = scalar_lea.vmem %s1686_s7, 1024  ;;  %p1688_p12 = scmp.lt.s32.totalorder %s2197_s6, %s1686_s7 }
  0xd8   : > { %p1683_p3 = pnand %p1681_p4, %p1667_p0  ;;  %p1689_p9 = scmp.lt.s32.totalorder %s1687_s13, %s1680_s17 }
  0xda   : > { %p1684_p6 = pneg %p1683_p3  ;;  %p1690_p2 = por %p1689_p9, %p1688_p12 }
  0xdc   : > { %p1691_p10 = pnand %p1690_p2, %p1684_p6 }
  0xde   : > { %1694 = shalt.err (!%p1691_p10)
}
  0xdf   : > { %1377 = dma.hbm_to_vmem [thread:$0]  (!%p2201_p1), %s2195_s20, 512, %s2197_s6, %s2212_s30, %s2462_s25, %s2462_s25, %s2461_s12  }
  0xe0   : > { %s359_s14 = sand.u32 1, %s1863_s15   ;;  %s1695_s8 = scalar_lea.hbm %s2208_s4, 512 }
  0xe1   : > { %s2244_s0 = scalar_lea.sflag [#allocation9], %s359_s14  ;;  %p1696_p12 = scmp.ne.s32.totalorder %s2208_s4, %s1695_s8 }
  0xe2   : > { %s1700_s17 = scalar_lea.hbm %s2475_s24, 2048  ;;  %p1701_p11 = scmp.lt.u32.totalorder %s2208_s4, %s2475_s24 }
  0xe3   : > { %p1698_p6 = pnand %p1696_p12, %p1667_p0  ;;  %p1702_p8 = scmp.lt.u32.totalorder %s1700_s17, %s1695_s8 }
  0xe4   : > { %p1704_p4 = scmp.lt.u32.totalorder %s1695_s8, %s2208_s4 }
  0xe5   : > { %p1699_p7 = pneg %p1698_p6  ;;  %p1703_p13 = por %p1702_p8, %p1701_p11 }
  0xe7   : > { %p1705_p3 = por %p1704_p4, %p1703_p13 }
  0xe9   : > { %p1706_p9 = pnand %p1705_p3, %p1699_p7 }
  0xeb   : > { %1709 = shalt.err (!%p1706_p9)
}
  0xec   : > { %s1710_s6 = scalar_lea.vmem %s2210_s23, 512  ;;  %s1875_s20 = smov [#allocation8]  }
  0xed   : > { %p1711_p2 = scmp.ne.s32.totalorder %s2210_s23, %s1710_s6  ;;  %s1715_s30 = sshll.u32 %s1875_s20, 4  ;;  %s1716_s30 = int_to_ptr.vmem [resolvable:$false] %s1715_s30 }
  0xee   : > { %s1717_s13 = scalar_lea.vmem %s1716_s30, 1024  ;;  %p1718_p6 = scmp.lt.s32.totalorder %s2210_s23, %s1716_s30 }
  0xef   : > { %p1713_p10 = pnand %p1711_p2, %p1667_p0  ;;  %p1719_p11 = scmp.lt.s32.totalorder %s1717_s13, %s1710_s6 }
  0xf1   : > { %p1714_p12 = pneg %p1713_p10  ;;  %p1720_p8 = por %p1719_p11, %p1718_p6 }
  0xf3   : > { %p1721_p13 = pnand %p1720_p8, %p1714_p12 }
  0xf5   : > { %1724 = shalt.err (!%p1721_p13)
}
  0xf6   : > { %1380 = dma.hbm_to_vmem [thread:$0]  (!%p2201_p1), %s2208_s4, 512, %s2210_s23, %s2244_s0, %s2462_s25, %s2462_s25, %s2461_s12  }
  0xf7   : > { %s2476_s14 = sld [smem:[#allocation28_spill]] }
  0xfd   : > { %p2477_p0 = scmp.ne.s32.totalorder %s2476_s14, 0 }
  0xfe   : > { %s387_s8 = sand.u32 (!%p2477_p0), 1, %s1839_s9  }
  0xff   : > { %385 = sbr.rel (%p2477_p0) target bundleno = 1262 (0x4ee), region = 52  ;;  %s1248_s18 = sshll.u32 (!%p2477_p0), %s387_s8, 5 }
 0x100   : > { %s388_s3 = scalar_lea.sflag (!%p2477_p0), [#allocation6], %s387_s8  ;;  %s2276_s17 = scalar_lea.vmem (!%p2477_p0), [#allocation5], %s1248_s18 }
 0x106   : > { %1798 = dma.done.wait (%p2162_p5), %s388_s3, 512  }
 0x107   : > { %1800 = vsyncadd (%p2162_p5), %s388_s3, 4294966784  ;;  %s396_s5 = sand.u32 1, %s1982_s16   ;;  %s2283_s12 = scalar_lea.vmem [#allocation8], %s1248_s18 }
 0x108   : > { %s397_s22 = scalar_lea.sflag [#allocation9], %s396_s5 }
 0x109   : > { %1802 = dma.done.wait (%p2162_p5), %s397_s22, 512  }
 0x10a   : > { %1804 = vsyncadd (%p2162_p5), %s397_s22, 4294966784  ;;  %p2478_p1 = scmp.eq.s32.totalorder %s1982_s16, 0 }
 0x10c   : > { %1806 = dma.done.wait (%p2478_p1), [#allocation9], 256   ;;  %p2479_p7 = pmov %p2478_p1 }
 0x10d   : > { %p2480_p4 = pmov %p2478_p1 }
 0x10e   : > { %1808 = vsyncadd (%p2479_p7), [#allocation9], 4294967040 }
 0x10f   : > { %1810 = dma.done.wait (%p2480_p4), [#allocation12], 512   ;;  %p2481_p3 = pmov %p2478_p1 }
 0x110   : > { %p2482_p9 = pmov %p2478_p1 }
 0x111   : > { %1812 = vsyncadd (%p2481_p3), [#allocation12], 4294966784 }
 0x112   : > { %1814 = dma.done.wait (%p2482_p9), [#allocation15], 2304   ;;  %p2483_p2 = pmov %p2478_p1 }
 0x113   : > { %s455_s25 = sand.u32 1, %s1827_s28   ;;  %s2484_s23 = sld [smem:[#allocation24_spill]] }
 0x114   : > { %1816 = vsyncadd (%p2483_p2), [#allocation15], 4294964992  ;;  %s1255_s1 = sshll.u32 %s455_s25, 4 }
 0x115   : > { %s2304_s4 = scalar_lea.vmem [#allocation17], %s1255_s1 }
 0x119   : > { %p1256_p5 = scmp.ne.s32.totalorder %s2484_s23, 0 }
 0x11a   : > { %v1876_v0 = vmov (!%p1256_p5), 0.0  }
 0x11b   : > { %464 = sbr.rel (%p1256_p5) target bundleno = 290 (0x122), region = 84  ;;  %465 = vst [vmem:[#allocation2] sm:$0xff] (!%p1256_p5), %v1876_v0  ;;  %466 = vst [vmem:[#allocation2 + $0x8] sm:$0xff] (!%p1256_p5), %v1876_v0 }
 0x11c   : > { %467 = vst [vmem:[#allocation3] sm:$0xff] (!%p1256_p5), %v1876_v0  ;;  %468 = vst [vmem:[#allocation3 + $0x8] sm:$0xff] (!%p1256_p5), %v1876_v0 }
 0x11d   : > { %469 = vst [vmem:[#allocation4] sm:$0xff] (!%p1256_p5), %v1876_v0  ;;  %470 = vst [vmem:[#allocation4 + $0x8] sm:$0xff] (!%p1256_p5), %v1876_v0 }
 0x122 PF: > { %v1498_v1 = vld [vmem:[#allocation13 + $0x4] ss:$8 sps:$4 sm:$0xff]   ;;  %v1500_v2 = vld [vmem:[#allocation13] ss:$8 sps:$4 sm:$0xff]   ;;  %v1877_v3 = vmov 0   ;;  %vm495_vm0 = vcmask 130048  }
 0x123   : > { %540 = vmatprep.mubr.bf16.mxu0 %v1877_v3  ;;  %v471_v4 = vld [vmem:[%s2276_s17] sm:$0xff]  ;;  %v472_v5 = vld [vmem:[%s2276_s17 + $0x8] sm:$0xff]  ;;  %642 = vmatprep.mubr.bf16.mxu1 %v1877_v3  ;;  %v473_v7 = vld [vmem:[%s2276_s17 + $0x10] sm:$0xff]  ;;  %s2485_s7 = sld [smem:[#allocation36_spill]]  ;;  %vm603_vm1 = vcmask 261120  }
 0x124   : > { %508 = vmatprep.subr.bf16.mxu0 %v1498_v1  ;;  %v475_v6 = vpack.c.bf16 %v472_v5, %v471_v4  ;;  %v474_v8 = vld [vmem:[%s2276_s17 + $0x18] sm:$0xff]  ;;  %v477_v10 = vld [vmem:[%s2283_s12] sm:$0xff]  ;;  %v478_v11 = vld [vmem:[%s2283_s12 + $0x8] sm:$0xff]  ;;  %s2486_s30 = sld [smem:[#allocation24_spill]] }
 0x125   : > { %509 = vmatpush1.bf16.msra.mxu0 %v1500_v2  ;;  %v476_v9 = vpack.c.bf16 %v474_v8, %v473_v7  ;;  %v481_v12 = vpack.c.bf16 %v478_v11, %v477_v10  ;;  %v479_v13 = vld [vmem:[%s2283_s12 + $0x10] sm:$0xff]  ;;  %v480_v14 = vld [vmem:[%s2283_s12 + $0x18] sm:$0xff] }
 0x126   : > { %v482_v15 = vpack.c.bf16 %v480_v14, %v479_v13  ;;  %v716_v51 = vld [vmem:[#allocation2] sm:$0xff]  ;;  %v717_v60 = vld [vmem:[#allocation2 + $0x8] sm:$0xff] }
 0x128   : > { %1259 = vmatmul.mubr.msk.bf16.vlgmr.msra.gmra.mrb[0].mxu0 %vm495_vm0, %v475_v6 }
 0x129   : > { %550 = vmatprep.mubr.bf16.mxu0 %v1877_v3  ;;  %v1501_v30 = vld [vmem:[%s2485_s7] sm:$0xff]   ;;  %v1502_v37 = vld [vmem:[%s2485_s7 + $0x8] sm:$0xff]  }
 0x12a   : > { %p1269_p10 = scmp.ne.s32.totalorder %s2486_s30, 1 }
 0x130   : > { %1260 = vmatmul.mubr.msk.bf16.gmra.mrb[4].mxu0 %vm495_vm0, %v476_v9 }
 0x131   : > { %560 = vmatprep.mubr.bf16.mxu0 %v1877_v3 }
 0x138   : > { %1261 = vmatmul.mubr.msk.bf16.gmra.mrb[8].mxu0 %vm495_vm0, %v481_v12 }
 0x139   : > { %570 = vmatprep.mubr.bf16.mxu0 %v1877_v3 }
 0x140   : > { %1262 = vmatmul.mubr.msk.bf16.gmra.mrb[12].mxu0 %vm495_vm0, %v482_v15 }
 0x1fb   : > { %v542_v16 = vpop.f32.mrb[0].mxu0 }
 0x1fc   : > { %v544_v17 = vpop.f32.mrb[1].mxu0 }
 0x1fd   : > { %v546_v18 = vpop.f32.mrb[2].mxu0 }
 0x1fe   : > { %v581_v19 = vpack.c.bf16 %v546_v18, %v542_v16  ;;  %v548_v20 = vpop.f32.mrb[3].mxu0 }
 0x1ff   : > { %v582_v21 = vpack.c.bf16 %v548_v20, %v544_v17  ;;  %v718_v20 = vld [vmem:[#allocation3] sm:$0xff] }
 0x203   : > { %v552_v22 = vpop.f32.mrb[4].mxu0 }
 0x204   : > { %v554_v23 = vpop.f32.mrb[5].mxu0 }
 0x205   : > { %v556_v24 = vpop.f32.mrb[6].mxu0 }
 0x206   : > { %v558_v25 = vpop.f32.mrb[7].mxu0  ;;  %v583_v26 = vpack.c.bf16 %v556_v24, %v552_v22 }
 0x207   : > { %v584_v27 = vpack.c.bf16 %v558_v25, %v554_v23 }
 0x208   : > { %610 = vmatprep.subr.bf16.mxu1 %v583_v26 }
 0x209   : > { %611 = vmatpush1.bf16.msra.mxu1 %v581_v19 }
 0x20a   : > { %612 = vmatprep.subr.bf16.mxu1 %v584_v27 }
 0x20b   : > { %v562_v28 = vpop.f32.mrb[8].mxu0 }
 0x20c   : > { %v564_v29 = vpop.f32.mrb[9].mxu0 }
 0x20d   : > { %v566_v31 = vpop.f32.mrb[10].mxu0  ;;  %613 = vmatpush1.bf16.msra.mxu1 %v582_v21  ;;  %v720_v21 = vld [vmem:[#allocation4] sm:$0xff] }
 0x20e   : > { %v585_v32 = vpack.c.bf16 %v566_v31, %v562_v28  ;;  %v568_v33 = vpop.f32.mrb[11].mxu0 }
 0x20f   : > { %v586_v34 = vpack.c.bf16 %v568_v33, %v564_v29  ;;  %v721_v33 = vld [vmem:[#allocation4 + $0x8] sm:$0xff] }
 0x210   : > { %1265 = vmatmul.mubr.msk.bf16.vlgmr.msra.gmra.mrb[0].mxu1 %vm603_vm1, %v1501_v30 }
 0x211   : > { %652 = vmatprep.mubr.bf16.mxu1 %v1877_v3 }
 0x213   : > { %v572_v35 = vpop.f32.mrb[12].mxu0 }
 0x214   : > { %v574_v36 = vpop.f32.mrb[13].mxu0 }
 0x215   : > { %v576_v38 = vpop.f32.mrb[14].mxu0 }
 0x216   : > { %v587_v39 = vpack.c.bf16 %v576_v38, %v572_v35  ;;  %v578_v40 = vpop.f32.mrb[15].mxu0 }
 0x217   : > { %v588_v41 = vpack.c.bf16 %v578_v40, %v574_v36 }
 0x218   : > { %1266 = vmatmul.mubr.msk.bf16.gmra.mrb[4].mxu1 %vm603_vm1, %v1502_v37  ;;  %663 = vmatprep.subr.bf16.mxu1 %v587_v39 }
 0x219   : > { %664 = vmatpush1.bf16.msra.mxu1 %v585_v32  ;;  %695 = vmatprep.mubr.bf16.mxu1 %v1877_v3  ;;  %v719_v32 = vld [vmem:[#allocation3 + $0x8] sm:$0xff] }
 0x21a   : > { %665 = vmatprep.subr.bf16.mxu1 %v588_v41 }
 0x21d   : > { %666 = vmatpush1.bf16.msra.mxu1 %v586_v34 }
 0x220   : > { %1267 = vmatmul.mubr.msk.bf16.vlgmr.msra.gmra.mrb[8].mxu1 %vm603_vm1, %v1501_v30 }
 0x221   : > { %705 = vmatprep.mubr.bf16.mxu1 %v1877_v3 }
 0x228   : > { %1268 = vmatmul.mubr.msk.bf16.gmra.mrb[12].mxu1 %vm603_vm1, %v1502_v37 }
 0x2e3   : > { %v644_v42 = vpop.f32.mrb[0].mxu1 }
 0x2e4   : > { %v646_v43 = vpop.f32.mrb[1].mxu1  ;;  %v722_v47 = vmul.f32 %v644_v42, %v644_v42 }
 0x2e5   : > { %v648_v44 = vpop.f32.mrb[2].mxu1  ;;  %v746_v50 = vmul.f32 %v646_v43, %v646_v43 }
 0x2e6   : > { %v650_v45 = vpop.f32.mrb[3].mxu1  ;;  %v723_v54 = vmul.f32 %v648_v44, %v648_v44 }
 0x2e7   : > { %v747_v58 = vmul.f32 %v650_v45, %v650_v45 }
 0x2eb   : > { %v654_v46 = vpop.f32.mrb[4].mxu1 }
 0x2ec   : > { %v724_v48 = vmul.f32 %v654_v46, %v654_v46  ;;  %v656_v49 = vpop.f32.mrb[5].mxu1 }
 0x2ed   : > { %v748_v52 = vmul.f32 %v656_v49, %v656_v49  ;;  %v658_v53 = vpop.f32.mrb[6].mxu1 }
 0x2ee   : > { %v726_v55 = vadd.f32 %v724_v48, %v722_v47  ;;  %v725_v56 = vmul.f32 %v658_v53, %v658_v53  ;;  %v660_v57 = vpop.f32.mrb[7].mxu1 }
 0x2ef   : > { %v750_v59 = vadd.f32 %v748_v52, %v746_v50  ;;  %v749_v61 = vmul.f32 %v660_v57, %v660_v57  ;;  %v1503_v52 = vld [vmem:[#allocation14] sm:$0xff] (!%p1269_p10)  }
 0x2f0   : > { %v728_v62 = vadd.f32 %v726_v55, %v716_v51  ;;  %v727_v63 = vadd.f32 %v725_v56, %v723_v54  ;;  %1328 = vmatprep.mubr.msk.bf16.mxu0 (!%p1269_p10), %vm603_vm1, %v1503_v52  ;;  %v1506_v54 = vld [vmem:[#allocation16] sm:$0xff] (!%p1269_p10)   ;;  %v1507_v55 = vld [vmem:[#allocation16 + $0x48] sm:$0xff] (!%p1269_p10)  }
 0x2f1   : > { %v751_v0 = vadd.f32 %v749_v61, %v747_v58  ;;  %v786_v56 = vld [vmem:[#allocation10] sm:$0xff] (!%p1269_p10)  ;;  %v1508_v58 = vld [vmem:[#allocation16 + $0x8] sm:$0xff] (!%p1269_p10)   ;;  %v1509_v61 = vld [vmem:[#allocation16 + $0x50] sm:$0xff] (!%p1269_p10)  }
 0x2f2   : > { %v752_v1 = vadd.f32 %v750_v59, %v728_v62  ;;  %v729_v2 = vadd.f32 %v727_v63, %v717_v60  ;;  %v787_v59 = vld [vmem:[#allocation10 + $0x8] sm:$0xff] (!%p1269_p10)  ;;  %v791_v60 = vld [vmem:[#allocation11 + $0x8] sm:$0xff] (!%p1269_p10) }
 0x2f3   : > { %v697_v3 = vpop.f32.mrb[8].mxu1 }
 0x2f4   : > { %770 = vst [vmem:[#allocation2] sm:$0xff] %v752_v1  ;;  %v753_v4 = vadd.f32 %v751_v0, %v729_v2  ;;  %v730_v5 = vmul.f32 %v697_v3, %v644_v42  ;;  %v740_v6 = vmul.f32 %v697_v3, %v654_v46  ;;  %v699_v7 = vpop.f32.mrb[9].mxu1  ;;  %v1510_v3 = vld [vmem:[#allocation16 + $0x10] sm:$0xff] (!%p1269_p10)  }
 0x2f5   : > { %v754_v8 = vmul.f32 %v699_v7, %v646_v43  ;;  %v764_v9 = vmul.f32 %v699_v7, %v656_v49  ;;  %v701_v10 = vpop.f32.mrb[10].mxu1  ;;  %v1511_v7 = vld [vmem:[#allocation16 + $0x58] sm:$0xff] (!%p1269_p10)  }
 0x2f6   : > { %771 = vst [vmem:[#allocation2 + $0x8] sm:$0xff] %v753_v4  ;;  %v731_v11 = vmul.f32 %v701_v10, %v648_v44  ;;  %v741_v12 = vmul.f32 %v701_v10, %v658_v53  ;;  %v703_v13 = vpop.f32.mrb[11].mxu1 }
 0x2f7   : > { %v755_v14 = vmul.f32 %v703_v13, %v650_v45  ;;  %v765_v15 = vmul.f32 %v703_v13, %v660_v57 }
 0x2fb   : > { %v707_v16 = vpop.f32.mrb[12].mxu1 }
 0x2fc   : > { %v732_v17 = vmul.f32 %v707_v16, %v654_v46  ;;  %v738_v18 = vmul.f32 %v707_v16, %v644_v42  ;;  %v709_v19 = vpop.f32.mrb[13].mxu1 }
 0x2fd   : > { %v756_v22 = vmul.f32 %v709_v19, %v656_v49  ;;  %v762_v23 = vmul.f32 %v709_v19, %v646_v43  ;;  %v711_v24 = vpop.f32.mrb[14].mxu1  ;;  %v781_v49 = vld [vmem:[#allocation2 + $0x8] sm:$0xff] (!%p1269_p10) }
 0x2fe   : > { %v734_v25 = vadd.f32 %v732_v17, %v730_v5  ;;  %v742_v26 = vsub.f32 %v738_v18, %v740_v6  ;;  %v733_v27 = vmul.f32 %v711_v24, %v658_v53  ;;  %v739_v28 = vmul.f32 %v711_v24, %v648_v44  ;;  %v713_v29 = vpop.f32.mrb[15].mxu1  ;;  %v1505_v53 = vld [vmem:[#allocation16 + $0x40] sm:$0xff] (!%p1269_p10)   ;;  %v1512_v18 = vld [vmem:[#allocation16 + $0x18] sm:$0xff] (!%p1269_p10)  }
 0x2ff   : > { %v758_v30 = vadd.f32 %v756_v22, %v754_v8  ;;  %v766_v31 = vsub.f32 %v762_v23, %v764_v9  ;;  %v757_v34 = vmul.f32 %v713_v29, %v660_v57  ;;  %v763_v35 = vmul.f32 %v713_v29, %v650_v45  ;;  %v780_v45 = vld [vmem:[#allocation2] sm:$0xff] (!%p1269_p10)  ;;  %1302 = vmatprep.subr.bf16.mxu1 (!%p1269_p10), %v1505_v53 }
 0x300   : > { %v736_v36 = vadd.f32 %v734_v25, %v718_v20  ;;  %v744_v37 = vadd.f32 %v742_v26, %v720_v21  ;;  %v735_v38 = vadd.f32 %v733_v27, %v731_v11  ;;  %v743_v39 = vsub.f32 %v739_v28, %v741_v12  ;;  %779 = sbr.rel (%p1269_p10) target bundleno = 1234 (0x4d2), region = 88  ;;  %v790_v57 = vld [vmem:[#allocation11] sm:$0xff] (!%p1269_p10)  ;;  %1303 = vmatpush3.bf16.msra.mxu1 (!%p1269_p10), %v1506_v54  ;;  %v1513_v21 = vld [vmem:[#allocation16 + $0x60] sm:$0xff] (!%p1269_p10)   ;;  %v1515_v27 = vld [vmem:[#allocation16 + $0x68] sm:$0xff] (!%p1269_p10)  }
 0x301   : > { %v759_v40 = vadd.f32 %v757_v34, %v755_v14  ;;  %v767_v41 = vsub.f32 %v763_v35, %v765_v15  ;;  %v782_v50 = vadd.f32 (!%p1269_p10), 0.0001, %v780_v45  ;;  %v783_v51 = vadd.f32 (!%p1269_p10), 0.0001, %v781_v49  ;;  %1304 = vmatprep.subr.bf16.mxu1 (!%p1269_p10), %v1507_v55  ;;  %v1514_v26 = vld [vmem:[#allocation16 + $0x20] sm:$0xff] (!%p1269_p10)   ;;  %v1516_v28 = vld [vmem:[#allocation16 + $0x28] sm:$0xff] (!%p1269_p10)  }
 0x302   : > { %v760_v42 = vadd.f32 %v758_v30, %v736_v36  ;;  %v768_v43 = vadd.f32 %v766_v31, %v744_v37  ;;  %v737_v46 = vadd.f32 %v735_v38, %v719_v32  ;;  %v745_v47 = vadd.f32 %v743_v39, %v721_v33  ;;  %v1517_v29 = vld [vmem:[#allocation16 + $0x70] sm:$0xff] (!%p1269_p10)   ;;  %v1504_v30 = vld [vmem:[#allocation14 + $0x8] sm:$0xff] (!%p1269_p10)  }
 0x303   : > { %1521 = vrcp.f32 (!%p1269_p10), %v782_v50  ;;  %v1518_v31 = vld [vmem:[#allocation16 + $0x30] sm:$0xff] (!%p1269_p10)   ;;  %v1519_v32 = vld [vmem:[#allocation16 + $0x78] sm:$0xff] (!%p1269_p10)  }
 0x304   : > { %772 = vst [vmem:[#allocation3] sm:$0xff] %v760_v42  ;;  %774 = vst [vmem:[#allocation4] sm:$0xff] %v768_v43  ;;  %v761_v44 = vadd.f32 %v759_v40, %v737_v46  ;;  %v769_v48 = vadd.f32 %v767_v41, %v745_v47  ;;  %1523 = vrcp.f32 (!%p1269_p10), %v783_v51  ;;  %1305 = vmatpush3.bf16.msra.mxu1 (!%p1269_p10), %v1508_v58  ;;  %v1520_v33 = vld [vmem:[#allocation16 + $0x38] sm:$0xff] (!%p1269_p10)  }
 0x305   : > { %1306 = vmatprep.subr.bf16.mxu1 (!%p1269_p10), %v1509_v61 }
 0x306   : > { %773 = vst [vmem:[#allocation3 + $0x8] sm:$0xff] %v761_v44  ;;  %775 = vst [vmem:[#allocation4 + $0x8] sm:$0xff] %v769_v48 }
 0x308   : > { %1307 = vmatpush3.bf16.msra.mxu1 %v1510_v3 }
 0x309   : > { %1308 = vmatprep.subr.bf16.mxu1 %v1511_v7 }
 0x30b   : > { %v794_v62 = vld [vmem:[#allocation3] sm:$0xff]  ;;  %v798_v63 = vld [vmem:[#allocation4] sm:$0xff] }
 0x30c   : > { %1309 = vmatpush3.bf16.msra.mxu1 %v1512_v18 }
 0x30d   : > { %v795_v0 = vld [vmem:[#allocation3 + $0x8] sm:$0xff]  ;;  %v799_v1 = vld [vmem:[#allocation4 + $0x8] sm:$0xff]  ;;  %v1522_v2 = vpop.eup %1521  ;;  %1310 = vmatprep.subr.bf16.mxu1 %v1513_v21 }
 0x30e   : > { %v1524_v4 = vpop.eup %1523  ;;  %v788_v5 = vmul.f32 %v1522_v2, %v786_v56  ;;  %v792_v6 = vmul.f32 %v1522_v2, %v790_v57 }
 0x30f   : > { %v789_v8 = vmul.f32 %v1524_v4, %v787_v59  ;;  %v793_v9 = vmul.f32 %v1524_v4, %v791_v60 }
 0x310   : > { %v796_v10 = vmul.f32 %v794_v62, %v788_v5  ;;  %v800_v11 = vmul.f32 %v798_v63, %v792_v6  ;;  %v804_v12 = vmul.f32 %v794_v62, %v792_v6  ;;  %v806_v13 = vmul.f32 %v798_v63, %v788_v5  ;;  %1311 = vmatpush3.bf16.msra.mxu1 %v1514_v26 }
 0x311   : > { %v797_v14 = vmul.f32 %v795_v0, %v789_v8  ;;  %v801_v15 = vmul.f32 %v799_v1, %v793_v9  ;;  %v805_v16 = vmul.f32 %v795_v0, %v793_v9  ;;  %v807_v17 = vmul.f32 %v799_v1, %v789_v8  ;;  %1312 = vmatprep.subr.bf16.mxu1 %v1515_v27 }
 0x312   : > { %v802_v19 = vsub.f32 %v796_v10, %v800_v11  ;;  %v808_v20 = vadd.f32 %v806_v13, %v804_v12 }
 0x313   : > { %v803_v22 = vsub.f32 %v797_v14, %v801_v15  ;;  %v809_v23 = vadd.f32 %v807_v17, %v805_v16 }
 0x314   : > { %1313 = vmatpush3.bf16.msra.mxu1 %v1516_v28 }
 0x315   : > { %v810_v24 = vpack.c.bf16 %v803_v22, %v802_v19  ;;  %v811_v25 = vpack.c.bf16 %v809_v23, %v808_v20  ;;  %1314 = vmatprep.subr.bf16.mxu1 %v1517_v29 }
 0x317   : > { %1324 = vmatprep.subr.bf16.mxu0 %v810_v24 }
 0x318   : > { %1325 = vmatpush3.bf16.msra.mxu0 %v810_v24  ;;  %1315 = vmatpush3.bf16.msra.mxu1 %v1518_v31 }
 0x319   : > { %1326 = vmatprep.subr.bf16.mxu0 %v811_v25  ;;  %1316 = vmatprep.subr.bf16.mxu1 %v1519_v32 }
 0x31c   : > { %1327 = vmatpush3.bf16.msra.mxu0 %v811_v25  ;;  %1317 = vmatpush3.bf16.msra.mxu1 %v1520_v33 }
 0x31f   : > { %1329 = vmatmul.mubr.msk.bf16.vlgmr.msra.gmra.mrb[0].mxu0 %vm603_vm1, %v1504_v30 }
 0x3f2   : > { %v1330_v34 = vpop.f32.mrb[0].mxu0 }
 0x3f3   : > { %v866_v35 = vpop.f32.mrb[1].mxu0 }
 0x3f4   : > { %v1331_v36 = vpop.f32.mrb[2].mxu0 }
 0x3f5   : > { %v869_v37 = vpop.f32.mrb[3].mxu0  ;;  %v882_v38 = vpack.c.bf16 %v1331_v36, %v1330_v34 }
 0x3f6   : > { %v881_v39 = vpack.c.bf16 %v869_v37, %v866_v35 }
 0x3f7   : > { %1043 = vmatprep.mubr.bf16.mxu1 %v882_v38 }
 0x3f8   : > { %1044 = vmatmul.mubr.bf16.vlgmr.msra.gmra.mrb[0].mxu1 %v881_v39 }
 0x4cb   : > { %v1318_v40 = vpop.f32.mrb[0].mxu1 }
 0x4cc   : > { %v1319_v41 = vpop.f32.mrb[1].mxu1 }
 0x4cd   : > { %v1320_v42 = vadd.f32 %v1319_v41, %v1318_v40  ;;  %v1321_v43 = vpop.f32.mrb[2].mxu1 }
 0x4ce   : > { %v1322_v46 = vpop.f32.mrb[3].mxu1 }
 0x4cf   : > { %1052 = vst [vmem:[%s2304_s4] sm:$0xff] %v1320_v42  ;;  %v1323_v47 = vadd.f32 %v1322_v46, %v1321_v43 }
 0x4d1   : > { %1053 = vst [vmem:[%s2304_s4 + $0x8] sm:$0xff] %v1323_v47 }
 0x4d2 PF: > { %s2487_s13 = sld [smem:[#allocation25_spill]]  ;;  %s2488_s3 = sld [smem:[#allocation39_spill]] }
 0x4d3   : > { %s1068_s5 = sshll.u32 %s2304_s4, 4  ;;  %s2353_s22 = scalar_lea.sflag [#allocation7], %s455_s25  ;;  %s2349_s5 = int_to_ptr.vmem [resolvable:$true] %s1068_s5 }
 0x4d4   : > { %s1725_s12 = scalar_lea.vmem %s2349_s5, 256  ;;  %p2489_p6 = scmp.ne.s32.totalorder %s2471_s11, 0 }
 0x4d5   : > { %p1726_p12 = scmp.ne.s32.totalorder %s2349_s5, %s1725_s12  ;;  %s1878_s1 = smov [#allocation17]  }
 0x4d6   : > { %s1729_s23 = sshll.u32 %s1878_s1, 4  ;;  %s1730_s23 = int_to_ptr.vmem [resolvable:$false] %s1729_s23 }
 0x4d7   : > { %p1727_p11 = pnand %p1726_p12, %p2489_p6  ;;  %s1731_s16 = scalar_lea.vmem %s1730_s23, 512 }
 0x4d8   : > { %s1297_s14 = sshll.u32 %s2487_s13, 8  ;;  %p1732_p13 = scmp.lt.s32.totalorder %s2349_s5, %s1730_s23 }
 0x4d9   : > { %s2346_s17 = scalar_lea.hbm %s2488_s3, %s1297_s14  ;;  %p1728_p8 = pneg %p1727_p11 }
 0x4da   : > { %p1733_p0 = scmp.lt.s32.totalorder %s1731_s16, %s1725_s12 }
 0x4dc   : > { %p1734_p1 = por %p1733_p0, %p1732_p13 }
 0x4de   : > { %p1735_p7 = pnand %p1734_p1, %p1728_p8 }
 0x4e0   : > { %1738 = shalt.err (!%p1735_p7)
}
 0x4e1   : > { %s1739_s25 = scalar_lea.hbm %s2346_s17, 256  ;;  %s1743_s6 = scalar_lea.hbm %s2488_s3, 512 }
 0x4e2   : > { %p1740_p4 = scmp.ne.s32.totalorder %s2346_s17, %s1739_s25  ;;  %p1744_p2 = scmp.lt.u32.totalorder %s2346_s17, %s2488_s3 }
 0x4e3   : > { %p1745_p5 = scmp.lt.u32.totalorder %s1743_s6, %s1739_s25  ;;  %p1747_p12 = scmp.lt.u32.totalorder %s1739_s25, %s2346_s17 }
 0x4e4   : > { %p1741_p3 = pnand %p1740_p4, %p2489_p6 }
 0x4e5   : > { %p1746_p10 = por %p1745_p5, %p1744_p2 }
 0x4e6   : > { %p1742_p9 = pneg %p1741_p3 }
 0x4e7   : > { %p1748_p11 = por %p1747_p12, %p1746_p10 }
 0x4e9   : > { %p1749_p8 = pnand %p1748_p11, %p1742_p9 }
 0x4eb   : > { %1752 = shalt.err (!%p1749_p8)
}
 0x4ec   : > { %s1879_s13 = smov 128   ;;  %s1880_s14 = smov 8  }
 0x4ed   : > { %1356 = dma.vmem_to_hbm [thread:$0]  (%p2489_p6), %s2349_s5, 256, %s2346_s17, %s2353_s22, %s1879_s13, %s1879_s13, %s1880_s14  }
 0x4ee PF: > { %p1396_p13 = scmp.ge.s32.totalorder %s1863_s15, 2  ;;  %s1083_s8 = sand.u32 1, %s1823_s27  }
 0x4ef   : > { %p2490_p0 = scmp.ne.s32.totalorder %s2472_s2, 0  ;;  %s1084_s18 = scalar_lea.sflag [#allocation7], %s1083_s8 }
 0x4f1   : > { %p1382_p1 = pnand %p1396_p13, %p2490_p0 }
 0x4f3   : > { %1818 = dma.done.wait (!%p1382_p1), %s1084_s18, 256  }
 0x4f4   : > { %1820 = vsyncadd (!%p1382_p1), %s1084_s18, 4294967040  ;;  %s29_s15 = sadd.s32 1, %s1863_s15   ;;  %s2491_s11 = sld [smem:[#allocation26_spill]] }
 0x4f5   : > { %p26_p7 = scmp.ge.s32.totalorder %s29_s15, 6   ;;  %s2492_s12 = sld [smem:[#allocation27_spill]] }
 0x4f6   : > { %s2493_s13 = sld [smem:[#allocation29_spill]]  ;;  %s2494_s14 = sld [smem:[#allocation30_spill]] }
 0x4f7   : > { %s2495_s27 = smov %s1827_s28  ;;  %s2496_s28 = smov %s1831_s29 }
 0x4f8   : > { %s2497_s29 = smov %s2179_s26  ;;  %s2498_s30 = smov %s1839_s9 }
 0x4f9   : > { %s2499_s9 = smov %s1843_s10  ;;  %s2500_s10 = smov %s2182_s19 }
 0x4fa   :  { %28 = sbr.rel (!%p26_p7) target bundleno = 23 (0x17), region = 138 }
 0x501   :  { %1089 = vsyncpa [#allocation6], 1 }
 0x502   :  { %1091 = vsyncpa [#allocation6 + $0x1], 1 }
 0x503   :  { %1092 = vsyncpa [#allocation9], 1 }
 0x504   :  { %1094 = vsyncpa [#allocation9 + $0x1], 1 }
 0x505   :  { %1095 = vsyncpa [#allocation12], 1 }
 0x506   :  { %1096 = vsyncpa [#allocation15], 1 }
 0x507   :  { %1097 = vsyncpa [#allocation7], 1 }
 0x508   :  { %1099 = vsyncpa [#allocation7 + $0x1], 1 }

</bundles_post_ra>
